<compile_context>
chip_gen: v5e
topology: v5e:2x2
jax: 0.10.0
libtpu: 0.0.40
codegen_flags: <defaults>
</compile_context>

<pallas_src>
import functools

import jax
import jax.numpy as jnp
from jax import lax
from jax.experimental import pallas as pl
from jax.experimental.pallas import tpu as pltpu


def _round_up(x, m):
    return ((x + m - 1) // m) * m


def _vq_kernel(z_ref, e_ref, zq_ref, idx_ref, sse_ref, *,
               batch, dim, s_valid, ne_chunk, mask_tail):
    """One spatial tile (all batches): nearest-codebook lookup + partial SSE.

    Shapes inside the kernel (channel-major, spatial on lanes):
      z_ref   : (batch*dim, tile_s)   input tile, rows = (b, d) channel-major
      e_ref   : (n_e, dim)            full codebook (constant block)
      zq_ref  : (batch*dim, tile_s)   quantized tile
      idx_ref : (batch, tile_s)       int32 nearest-code indices
      sse_ref : (1, tile_s)           per-lane partial sum of squared error
    """
    tile_s = z_ref.shape[1]
    n_e = e_ref.shape[0]

    sq_lanes = jnp.zeros((1, tile_s), jnp.float32)
    zq_rows = []
    idx_rows = []

    # batch is a small static constant -> unrolled.  For B > ~4 this should
    # move onto a parallel grid axis instead (bounds live ranges per step).
    for b in range(batch):
        zb = z_ref[pl.ds(b * dim, dim), :].astype(jnp.float32)   # (dim, tile_s)

        best_d = None   # (1, tile_s) running min distance (up to ||z||^2 shift)
        best_i = None   # (1, tile_s) running argmin (int32, global code id)
        best_q = None   # (dim, tile_s) running gathered code vector

        # Online argmin over codebook chunks (static Python loop; single chunk
        # for small n_e, so no merge overhead in the toy configuration).
        for c0 in range(0, n_e, ne_chunk):
            nc = min(ne_chunk, n_e - c0)
            e = e_ref[pl.ds(c0, nc), :].astype(jnp.float32)       # (nc, dim)
            # ||e||^2 recomputed in-kernel (nc*dim MACs, free) -> no esq input.
            esq = jnp.sum(e * e, axis=1, keepdims=True)           # (nc, 1)

            # d2 = ||e||^2 - 2 e.z   (||z||^2 is constant per column -> dropped)
            ez = lax.dot_general(e, zb, (((1,), (0,)), ((), ())),
                                 preferred_element_type=jnp.float32)  # (nc, tile_s)
            d2 = esq - 2.0 * ez

            # argmin over the chunk (sublane axis), first-index tie-break,
            # all-int32 index path (no float row ids / sentinel).
            row_ids = lax.broadcasted_iota(jnp.int32, (nc, tile_s), 0)
            dmin = jnp.min(d2, axis=0, keepdims=True)             # (1, tile_s)
            is_min = d2 == dmin
            loc = jnp.min(jnp.where(is_min, row_ids, nc),
                          axis=0, keepdims=True)                  # (1, tile_s) i32

            # codebook gather via one-hot matmul (MXU-friendly, no gather)
            onehot = (row_ids == loc).astype(jnp.float32)         # (nc, tile_s)
            zq_c = lax.dot_general(e, onehot, (((0,), (0,)), ((), ())),
                                   preferred_element_type=jnp.float32)  # (dim, tile_s)
            gid = loc + c0

            if best_d is None:
                best_d, best_i, best_q = dmin, gid, zq_c
            else:
                better = dmin < best_d        # strict '<': earlier chunk wins ties
                best_d = jnp.where(better, dmin, best_d)
                best_i = jnp.where(better, gid, best_i)
                best_q = jnp.where(better, zq_c, best_q)

        zq_rows.append(best_q)
        idx_rows.append(best_i)
        diff = best_q - zb
        sq_lanes = sq_lanes + jnp.sum(diff * diff, axis=0, keepdims=True)

    # Single dense stores: (batch*dim, tile_s) = one full sublane group for zq,
    # one store for all idx rows (instead of per-b masked partial stores).
    zq_ref[...] = jnp.concatenate(zq_rows, axis=0).astype(zq_ref.dtype)
    idx_ref[...] = jnp.concatenate(idx_rows, axis=0)

    if mask_tail:
        # only the ragged (<128 col) tail when S % 128 != 0
        s = pl.program_id(0)
        col = s * tile_s + lax.broadcasted_iota(jnp.int32, (1, tile_s), 1)
        sq_lanes = jnp.where(col < s_valid, sq_lanes, 0.0)
    sse_ref[...] = sq_lanes


def _choose_tile_s(S128, max_tile_s):
    """tile_s = p*128 where p divides S128/128.  Prefer (in order):
    tile >= 512 lanes, >= 4 grid steps, >= 2 grid steps, fattest tile."""
    m = S128 // 128
    max_p = max(1, max_tile_s // 128)
    divisors = [p for p in range(1, m + 1) if m % p == 0 and p <= max_p]

    def score(p):
        nt = m // p
        return (min(p, 4), int(nt >= 4), int(nt >= 2), p)

    p = max(divisors, key=score)
    return p * 128, m // p


def vector_quantize(z, codebook, beta=0.25, max_tile_s=4096):
    """Forward pass of VectorQuantizer (remap=None, sane_index_shape=False,
    legacy=True). Returns (z_q [NCHW], loss, (None, None, indices))."""
    B, C, H, W = z.shape
    D = C
    n_e, D2 = codebook.shape
    assert D2 == D
    S = H * W
    N = B * S

    # channel-major the whole way: (B, C, H, W) -> (B*D, S) is a free reshape,
    # no NCHW<->NHWC transposes anywhere.
    z2 = z.reshape(B * D, S)

    S_pad = _round_up(S, 128)
    tile_s, num_tiles = _choose_tile_s(S_pad, max_tile_s)
    if S_pad != S:
        # < 128 columns, only for non-128-multiple spatial sizes
        z2 = jnp.pad(z2, ((0, 0), (0, S_pad - S)))

    # codebook-chunk size: keep each (chunk, tile_s) f32 intermediate <= ~1 MiB
    ne_budget = max(8, (1 << 20) // (4 * tile_s))
    ne_chunk = min(n_e, (ne_budget // 8) * 8)
    ne_chunk = max(ne_chunk, 1)

    kernel = functools.partial(
        _vq_kernel, batch=B, dim=D, s_valid=S, ne_chunk=ne_chunk,
        mask_tail=(S_pad != S))

    zq2, idx, sse_lanes = pl.pallas_call(
        kernel,
        out_shape=(
            jax.ShapeDtypeStruct((B * D, S_pad), z.dtype),   # quantized (chan-major)
            jax.ShapeDtypeStruct((B, S_pad), jnp.int32),     # nearest-code indices
            jax.ShapeDtypeStruct((1, S_pad), jnp.float32),   # per-lane partial SSE
        ),
        grid_spec=pltpu.PrefetchScalarGridSpec(
            num_scalar_prefetch=0,
            grid=(num_tiles,),
            in_specs=[
                pl.BlockSpec((B * D, tile_s), lambda s: (0, s)),  # z tile
                pl.BlockSpec((n_e, D), lambda s: (0, 0)),         # codebook
            ],
            out_specs=(
                pl.BlockSpec((B * D, tile_s), lambda s: (0, s)),
                pl.BlockSpec((B, tile_s), lambda s: (0, s)),
                pl.BlockSpec((1, tile_s), lambda s: (0, s)),
            ),
        ),
        compiler_params=pltpu.CompilerParams(
            dimension_semantics=("parallel",),       # independent tiles (2-TC on v7x)
            vmem_limit_bytes=32 * 1024 * 1024,
        ),
    )(z2, codebook)

    z_q = zq2[:, :S].reshape(B, D, H, W)              # already NCHW
    indices = idx[:, :S].reshape(-1)                  # flat (B*H*W,), NHWC order

    sse = jnp.sum(sse_lanes)
    mse = sse / jnp.float32(N * D)
    # legacy=True: beta * mean((zq.sg - z)^2) + mean((zq - z.sg)^2)
    # (both terms have the same forward value)
    loss = beta * mse + mse

    # straight-through estimator: forward value of z + (z_q - z).detach() == z_q
    # perplexity / min_encodings are always None in the reference forward.
    return z_q, loss, (None, None, indices)


def _reference(z, codebook, beta):
    """Pure-JAX reference mirroring the PyTorch forward."""
    B, C, H, W = z.shape
    z_nhwc = jnp.transpose(z, (0, 2, 3, 1))
    z_flat = z_nhwc.reshape(-1, C)
    d2 = (jnp.sum(z_flat**2, -1, keepdims=True)
          - 2.0 * z_flat @ codebook.T
          + jnp.sum(codebook**2, -1)[None, :])
    idx = jnp.argmin(d2, axis=-1)
    zq = codebook[idx].reshape(z_nhwc.shape)
    loss = beta * jnp.mean((zq - z_nhwc) ** 2) + jnp.mean((zq - z_nhwc) ** 2)
    zq = jnp.transpose(zq, (0, 3, 1, 2))
    return zq, loss, idx


if __name__ == "__main__":
    # Module hyper-params (synthetic, deterministic init — no checkpoint).
    n_e = 16          # codebook size
    vq_embed_dim = 4  # == channel dim of z
    beta = 0.25

    key = jax.random.PRNGKey(0)
    k_emb, k_z = jax.random.split(key)

    # nn.Embedding weight ~ U(-1/n_e, 1/n_e), shape (n_e, vq_embed_dim)
    codebook = jax.random.uniform(
        k_emb, (n_e, vq_embed_dim), dtype=jnp.float32,
        minval=-1.0 / n_e, maxval=1.0 / n_e)

    # input z: NCHW, batch=2, channels=vq_embed_dim, spatial=16x16
    z = jax.random.normal(k_z, (2, vq_embed_dim, 16, 16), dtype=jnp.float32)

    z_q, loss, (_, _, indices) = jax.block_until_ready(
        vector_quantize(z, codebook, beta=beta))

    zq_ref, loss_ref, idx_ref = _reference(z, codebook, beta)
    assert z_q.shape == z.shape
    assert indices.shape == (z.shape[0] * z.shape[2] * z.shape[3],)
    assert jnp.allclose(z_q, zq_ref, atol=1e-5)
    assert jnp.allclose(loss, loss_ref, atol=1e-5)
    assert jnp.all(indices == idx_ref)

    print("KERNEL_OK")
</pallas_src>

<mosaic_0001>
module attributes {stable_mosaic.version = 11 : i64} {
  func.func @_vq_kernel(%arg0: i32, %arg1: memref<8x256xf32, #tpu.memory_space<vmem>>, %arg2: memref<16x4xf32, #tpu.memory_space<vmem>>, %arg3: memref<8x256xf32, #tpu.memory_space<vmem>>, %arg4: memref<2x256xi32, #tpu.memory_space<vmem>>, %arg5: memref<1x256xf32, #tpu.memory_space<vmem>>) attributes {dimension_semantics = [#tpu.dimension_semantics<parallel>], iteration_bounds = array<i64: 1>, scalar_prefetch = 0 : i64, scratch_operands = 0 : i64, tpu.core_type = #tpu.core_type<tc>, window_params = [{transform_indices = @transform_0, window_bounds = array<i64: 8, 256>}, {pipeline_mode = #tpu.pipeline_mode<synchronous>, transform_indices = @transform_1, window_bounds = array<i64: 16, 4>}, {transform_indices = @transform_2, window_bounds = array<i64: 8, 256>}, {transform_indices = @transform_3, window_bounds = array<i64: 2, 256>}, {transform_indices = @transform_4, window_bounds = array<i64: 1, 256>}]} {
    %cst = arith.constant 0.000000e+00 : f32
    %0 = vector.broadcast %cst : f32 to vector<1x256xf32>
    %c0 = arith.constant 0 : index
    %c0_0 = arith.constant 0 : index
    %1 = vector.load %arg1[%c0, %c0_0] : memref<8x256xf32, #tpu.memory_space<vmem>>, vector<4x256xf32>
    %c0_1 = arith.constant 0 : index
    %c0_2 = arith.constant 0 : index
    %2 = vector.load %arg2[%c0_1, %c0_2] : memref<16x4xf32, #tpu.memory_space<vmem>>, vector<16x4xf32>
    %3 = arith.mulf %2, %2 : vector<16x4xf32>
    %cst_3 = arith.constant dense<0.000000e+00> : vector<16xf32>
    %4 = vector.multi_reduction <add>, %3, %cst_3 [1] : vector<16x4xf32> to vector<16xf32>
    %5 = vector.shape_cast %4 : vector<16xf32> to vector<16x1xf32>
    %cst_4 = arith.constant dense<0.000000e+00> : vector<16x256xf32>
    %6 = tpu.matmul %2, %1, %cst_4 {dimension_numbers = #tpu.dot_dimension_numbers<[1], [0], [0], [1], [0, 0, 1, 1], [], []>} : vector<16x4xf32>, vector<4x256xf32>, vector<16x256xf32> -> vector<16x256xf32>
    %cst_5 = arith.constant 2.000000e+00 : f32
    %7 = vector.broadcast %cst_5 : f32 to vector<16x256xf32>
    %8 = arith.mulf %7, %6 : vector<16x256xf32>
    %9 = vector.broadcast %5 : vector<16x1xf32> to vector<16x256xf32>
    %10 = arith.subf %9, %8 : vector<16x256xf32>
    %11 = tpu.iota {dimensions = array<i32: 0>} : vector<16x256xi32>
    %cst_6 = arith.constant dense<0x7F800000> : vector<256xf32>
    %12 = vector.multi_reduction <minimumf>, %10, %cst_6 [0] : vector<16x256xf32> to vector<256xf32>
    %13 = vector.shape_cast %12 : vector<256xf32> to vector<1x256xf32>
    %14 = vector.broadcast %13 : vector<1x256xf32> to vector<16x256xf32>
    %15 = arith.cmpf oeq, %10, %14 : vector<16x256xf32>
    %c16_i32 = arith.constant 16 : i32
    %16 = vector.broadcast %c16_i32 : i32 to vector<16x256xi32>
    %17 = arith.select %15, %11, %16 : vector<16x256xi1>, vector<16x256xi32>
    %cst_7 = arith.constant dense<2147483647> : vector<256xi32>
    %18 = vector.multi_reduction <minsi>, %17, %cst_7 [0] : vector<16x256xi32> to vector<256xi32>
    %19 = vector.shape_cast %18 : vector<256xi32> to vector<1x256xi32>
    %20 = vector.broadcast %19 : vector<1x256xi32> to vector<16x256xi32>
    %21 = arith.cmpi eq, %11, %20 : vector<16x256xi32>
    %22 = arith.extui %21 : vector<16x256xi1> to vector<16x256xi32>
    %23 = arith.sitofp %22 : vector<16x256xi32> to vector<16x256xf32>
    %cst_8 = arith.constant dense<0.000000e+00> : vector<4x256xf32>
    %24 = tpu.matmul %2, %23, %cst_8 {dimension_numbers = #tpu.dot_dimension_numbers<[0], [0], [1], [1], [0, 1, 1, 1], [], []>} : vector<16x4xf32>, vector<16x256xf32>, vector<4x256xf32> -> vector<4x256xf32>
    %c0_i32 = arith.constant 0 : i32
    %25 = vector.broadcast %c0_i32 : i32 to vector<1x256xi32>
    %26 = arith.addi %19, %25 : vector<1x256xi32>
    %27 = arith.subf %24, %1 : vector<4x256xf32>
    %28 = arith.mulf %27, %27 : vector<4x256xf32>
    %cst_9 = arith.constant dense<0.000000e+00> : vector<256xf32>
    %29 = vector.multi_reduction <add>, %28, %cst_9 [0] : vector<4x256xf32> to vector<256xf32>
    %30 = vector.shape_cast %29 : vector<256xf32> to vector<1x256xf32>
    %31 = arith.addf %0, %30 : vector<1x256xf32>
    %c4 = arith.constant 4 : index
    %c0_10 = arith.constant 0 : index
    %32 = vector.load %arg1[%c4, %c0_10] : memref<8x256xf32, #tpu.memory_space<vmem>>, vector<4x256xf32>
    %c0_11 = arith.constant 0 : index
    %c0_12 = arith.constant 0 : index
    %33 = vector.load %arg2[%c0_11, %c0_12] : memref<16x4xf32, #tpu.memory_space<vmem>>, vector<16x4xf32>
    %34 = arith.mulf %33, %33 : vector<16x4xf32>
    %cst_13 = arith.constant dense<0.000000e+00> : vector<16xf32>
    %35 = vector.multi_reduction <add>, %34, %cst_13 [1] : vector<16x4xf32> to vector<16xf32>
    %36 = vector.shape_cast %35 : vector<16xf32> to vector<16x1xf32>
    %cst_14 = arith.constant dense<0.000000e+00> : vector<16x256xf32>
    %37 = tpu.matmul %33, %32, %cst_14 {dimension_numbers = #tpu.dot_dimension_numbers<[1], [0], [0], [1], [0, 0, 1, 1], [], []>} : vector<16x4xf32>, vector<4x256xf32>, vector<16x256xf32> -> vector<16x256xf32>
    %cst_15 = arith.constant 2.000000e+00 : f32
    %38 = vector.broadcast %cst_15 : f32 to vector<16x256xf32>
    %39 = arith.mulf %38, %37 : vector<16x256xf32>
    %40 = vector.broadcast %36 : vector<16x1xf32> to vector<16x256xf32>
    %41 = arith.subf %40, %39 : vector<16x256xf32>
    %42 = tpu.iota {dimensions = array<i32: 0>} : vector<16x256xi32>
    %cst_16 = arith.constant dense<0x7F800000> : vector<256xf32>
    %43 = vector.multi_reduction <minimumf>, %41, %cst_16 [0] : vector<16x256xf32> to vector<256xf32>
    %44 = vector.shape_cast %43 : vector<256xf32> to vector<1x256xf32>
    %45 = vector.broadcast %44 : vector<1x256xf32> to vector<16x256xf32>
    %46 = arith.cmpf oeq, %41, %45 : vector<16x256xf32>
    %c16_i32_17 = arith.constant 16 : i32
    %47 = vector.broadcast %c16_i32_17 : i32 to vector<16x256xi32>
    %48 = arith.select %46, %42, %47 : vector<16x256xi1>, vector<16x256xi32>
    %cst_18 = arith.constant dense<2147483647> : vector<256xi32>
    %49 = vector.multi_reduction <minsi>, %48, %cst_18 [0] : vector<16x256xi32> to vector<256xi32>
    %50 = vector.shape_cast %49 : vector<256xi32> to vector<1x256xi32>
    %51 = vector.broadcast %50 : vector<1x256xi32> to vector<16x256xi32>
    %52 = arith.cmpi eq, %42, %51 : vector<16x256xi32>
    %53 = arith.extui %52 : vector<16x256xi1> to vector<16x256xi32>
    %54 = arith.sitofp %53 : vector<16x256xi32> to vector<16x256xf32>
    %cst_19 = arith.constant dense<0.000000e+00> : vector<4x256xf32>
    %55 = tpu.matmul %33, %54, %cst_19 {dimension_numbers = #tpu.dot_dimension_numbers<[0], [0], [1], [1], [0, 1, 1, 1], [], []>} : vector<16x4xf32>, vector<16x256xf32>, vector<4x256xf32> -> vector<4x256xf32>
    %c0_i32_20 = arith.constant 0 : i32
    %56 = vector.broadcast %c0_i32_20 : i32 to vector<1x256xi32>
    %57 = arith.addi %50, %56 : vector<1x256xi32>
    %58 = arith.subf %55, %32 : vector<4x256xf32>
    %59 = arith.mulf %58, %58 : vector<4x256xf32>
    %cst_21 = arith.constant dense<0.000000e+00> : vector<256xf32>
    %60 = vector.multi_reduction <add>, %59, %cst_21 [0] : vector<4x256xf32> to vector<256xf32>
    %61 = vector.shape_cast %60 : vector<256xf32> to vector<1x256xf32>
    %62 = arith.addf %31, %61 : vector<1x256xf32>
    %63 = tpu.concatenate %24, %55 in 0 : vector<4x256xf32>, vector<4x256xf32> -> vector<8x256xf32>
    %c0_22 = arith.constant 0 : index
    %c0_23 = arith.constant 0 : index
    %64 = vector.load %arg3[%c0_22, %c0_23] : memref<8x256xf32, #tpu.memory_space<vmem>>, vector<8x256xf32>
    tpu.vector_store %arg3[%c0_22, %c0_23], %63 {strides = array<i32>} : memref<8x256xf32, #tpu.memory_space<vmem>>, vector<8x256xf32>,
    %65 = tpu.concatenate %26, %57 in 0 : vector<1x256xi32>, vector<1x256xi32> -> vector<2x256xi32>
    %c0_24 = arith.constant 0 : index
    %c0_25 = arith.constant 0 : index
    %66 = vector.load %arg4[%c0_24, %c0_25] : memref<2x256xi32, #tpu.memory_space<vmem>>, vector<2x256xi32>
    tpu.vector_store %arg4[%c0_24, %c0_25], %65 {strides = array<i32>} : memref<2x256xi32, #tpu.memory_space<vmem>>, vector<2x256xi32>,
    %c0_26 = arith.constant 0 : index
    %c0_27 = arith.constant 0 : index
    %67 = vector.load %arg5[%c0_26, %c0_27] : memref<1x256xf32, #tpu.memory_space<vmem>>, vector<1x256xf32>
    tpu.vector_store %arg5[%c0_26, %c0_27], %62 {strides = array<i32>} : memref<1x256xf32, #tpu.memory_space<vmem>>, vector<1x256xf32>,
    return
  }
  func.func @transform_0(%arg0: i32) -> (i32, i32) {
    %c0_i32 = arith.constant 0 : i32
    %c0_i32_0 = arith.constant 0 : i32
    return %c0_i32, %arg0 : i32, i32
  }
  func.func @transform_1(%arg0: i32) -> (i32, i32) {
    %c0_i32 = arith.constant 0 : i32
    %c0_i32_0 = arith.constant 0 : i32
    %c0_i32_1 = arith.constant 0 : i32
    return %c0_i32, %c0_i32_0 : i32, i32
  }
  func.func @transform_2(%arg0: i32) -> (i32, i32) {
    %c0_i32 = arith.constant 0 : i32
    %c0_i32_0 = arith.constant 0 : i32
    return %c0_i32, %arg0 : i32, i32
  }
  func.func @transform_3(%arg0: i32) -> (i32, i32) {
    %c0_i32 = arith.constant 0 : i32
    %c0_i32_0 = arith.constant 0 : i32
    return %c0_i32, %arg0 : i32, i32
  }
  func.func @transform_4(%arg0: i32) -> (i32, i32) {
    %c0_i32 = arith.constant 0 : i32
    %c0_i32_0 = arith.constant 0 : i32
    return %c0_i32, %arg0 : i32, i32
  }
}

</mosaic_0001>

<bundles_post_ra>
// kernel: tpu_custom_call.1
= control target key start
LH: loop header
LB: loop body
LE: loop exit
PB: predicated region body
PF: predicated region fallthrough
CT: control target
= control target key end

     0   :  { %10 = vsyncpa [#allocation3], 0  ;;  %vm35_vm0 = vcmask 1043456   ;;  %vm22_vm1 = vcmask 31744   ;;  %s810_s0 = inlined_call_operand.vmem [shape: f32[8,256], index: 0, kind: input, shape index: {}]   ;;  %s811_s1 = inlined_call_operand.vmem [shape: f32[16,4], index: 1, kind: input, shape index: {}]   ;;  %s812_s2 = inlined_call_operand.hbm [shape: f32[8,256], index: 2, kind: output, shape index: {0}]   ;;  %s813_s3 = inlined_call_operand.hbm [shape: s32[2,256], index: 3, kind: output, shape index: {1}]   ;;  %s814_s4 = inlined_call_operand.hbm [shape: f32[1,256], index: 4, kind: output, shape index: {2}]  }
   0x1   :  { %v652_v0 = vld [vmem:[%s810_s0] sm:$0xf]  ;;  %v657_v1 = vld [vmem:[%s810_s0 + $0x8] sm:$0xf] }
   0x2   :  { %v662_v2 = vld [vmem:[%s811_s1] sm:$0xff]  ;;  %507 = vmatpush.msk.msra.mxu0 %vm35_vm0, %v652_v0  ;;  %510 = vmatpush.msk.msra.mxu1 %vm35_vm0, %v657_v1 }
   0x3   :  { %v20_v3 = vmul.f32 %v662_v2, %v662_v2 }
   0x4   :  { %11 = vsyncpa [#allocation5], 0  ;;  %508 = vmatmul.msk.f32.vlgmr.msra.gmra.mxu0 %vm22_vm1, %v662_v2  ;;  %511 = vmatmul.msk.f32.vlgmr.msra.gmra.mxu1 %vm22_vm1, %v662_v2  ;;  %v679_v5 = vld [vmem:[%s811_s1 + $0x8] sm:$0xff]  ;;  %v96_v26 = vlaneseq  ;;  %v710_v55 = vld [vmem:[%s810_s0] sm:$0xf0]  ;;  %v620_v59 = vmov 1.0  }
   0x5   :  { %155 = vxpose.xlu1.b32.start [1/2] (short) (narrow) %v662_v2, 8  ;;  %v23_v4 = vsel %vm22_vm1, %v20_v3, 0.0  ;;  %v21_v6 = vmul.f32 %v679_v5, %v679_v5  ;;  %v715_v56 = vld [vmem:[%s810_s0 + $0x8] sm:$0xf0]  ;;  %v255_v61 = vrot.slane %v710_v55, 4  ;;  %s478_s27 = sshll.u32 %s813_s3, 4  ;;  %s479_s27 = int_to_ptr.hbm [resolvable:$true] %s478_s27 }
   0x6   :  { %24 = vadd.xlane.f32.xlu0 %v23_v4  ;;  %v698_v31 = vshrl.u32 %v96_v26, 7  ;;  %v256_v62 = vrot.slane %v715_v56, 4  ;;  %s621_s28 = smov [#allocation4]   ;;  %s622_s3 = smov [#allocation2]  }
   0x7   :  { %v26_v7 = vsel %vm22_vm1, %v21_v6, 0.0  ;;  %s476_s29 = sshll.u32 %s621_s28, 4  ;;  %s465_s30 = sshll.u32 %s622_s3, 4  ;;  %s477_s29 = int_to_ptr.vmem [resolvable:$true] %s476_s29  ;;  %s466_s30 = int_to_ptr.vmem [resolvable:$true] %s465_s30 }
   0x8   :  { %v701_v36 = vadd.s32 8, %v698_v31  ;;  %s467_s7 = sshll.u32 %s812_s2, 4  ;;  %s623_s2 = smov [#allocation6]   ;;  %s468_s7 = int_to_ptr.hbm [resolvable:$true] %s467_s7 }
   0x9   :  { %s487_s8 = sshll.u32 %s623_s2, 4  ;;  %s489_s11 = sshll.u32 %s814_s4, 4  ;;  %s488_s8 = int_to_ptr.vmem [resolvable:$true] %s487_s8  ;;  %s490_s11 = int_to_ptr.hbm [resolvable:$true] %s489_s11 }
   0xc   :  { %509 = vmatmul.msk.f32.gmra.mxu0 %vm22_vm1, %v679_v5  ;;  %512 = vmatmul.msk.f32.gmra.mxu1 %vm22_vm1, %v679_v5 }
   0xd   :  { %156 = vxpose.xlu1.b32.end [2/2] (short) (narrow) %v679_v5, 8 }
   0xe   :  { %27 = vadd.xlane.f32.xlu0 %v26_v7 }
  0x79   :  { %v689_v8 = vpop.xlane.xlu0 %24 }
  0x81   :  { %v59_v9 = vpop.f32.mrf.mxu0  ;;  %v82_v10 = vpop.f32.mrf.mxu1 }
  0x82   :  { %v88_v11 = vmul.f32 2.0, %v59_v9  ;;  %v89_v12 = vmul.f32 2.0, %v82_v10  ;;  %v691_v13 = vpop.xlane.xlu0 %27 }
  0x84   :  { %v92_v18 = vsub.f32 %v689_v8, %v88_v11  ;;  %v93_v19 = vsub.f32 %v689_v8, %v89_v12 }
  0x89   :  { %v62_v14 = vpop.f32.mrf.mxu0  ;;  %v85_v15 = vpop.f32.mrf.mxu1 }
  0x8a   :  { %v90_v16 = vmul.f32 2.0, %v62_v14  ;;  %v91_v17 = vmul.f32 2.0, %v85_v15 }
  0x8c   :  { %v94_v20 = vsub.f32 %v691_v13, %v90_v16  ;;  %v95_v21 = vsub.f32 %v691_v13, %v91_v17 }
  0x8e   :  { %v99_v22 = vmin.f32 %v92_v18, %v94_v20  ;;  %v106_v23 = vmin.f32 %v93_v19, %v95_v21 }
  0x90   :  { %v100_v24 = vrot.slane %v99_v22, 4  ;;  %v107_v25 = vrot.slane %v106_v23, 4 }
  0x92   :  { %v101_v27 = vmin.f32 %v99_v22, %v100_v24  ;;  %v108_v28 = vmin.f32 %v106_v23, %v107_v25 }
  0x94   :  { %v102_v29 = vrot.slane %v101_v27, 2  ;;  %v109_v30 = vrot.slane %v108_v28, 2 }
  0x96   :  { %v103_v32 = vmin.f32 %v101_v27, %v102_v29  ;;  %v110_v33 = vmin.f32 %v108_v28, %v109_v30 }
  0x98   :  { %v104_v34 = vrot.slane %v103_v32, 1  ;;  %v111_v35 = vrot.slane %v110_v33, 1 }
  0x9a   :  { %v105_v37 = vmin.f32 %v103_v32, %v104_v34  ;;  %v112_v38 = vmin.f32 %v110_v33, %v111_v35 }
  0x9c   :  { %vm113_vm2 = vcmp.eq.f32.partialorder %v92_v18, %v105_v37  ;;  %vm114_vm3 = vcmp.eq.f32.partialorder %v93_v19, %v112_v38  ;;  %vm115_vm4 = vcmp.eq.f32.partialorder %v94_v20, %v105_v37  ;;  %vm116_vm5 = vcmp.eq.f32.partialorder %v95_v21, %v112_v38 }
  0x9d   :  { %v117_v39 = vsel %vm113_vm2, %v698_v31, 16  ;;  %v118_v40 = vsel %vm114_vm3, %v698_v31, 16  ;;  %v119_v41 = vsel %vm115_vm4, %v701_v36, 16  ;;  %v120_v42 = vsel %vm116_vm5, %v701_v36, 16 }
  0x9e   :  { %vm121_vm6 = vcmp.lt.s32.totalorder %v117_v39, %v119_v41  ;;  %vm132_vm7 = vcmp.lt.s32.totalorder %v118_v40, %v120_v42  ;;  %vm187_vm2 = vcmask 130048  }
  0x9f   :  { %v122_v43 = vsel %vm121_vm6, %v117_v39, %v119_v41  ;;  %v133_v44 = vsel %vm132_vm7, %v118_v40, %v120_v42 }
  0xa0   :  { %v123_v45 = vrot.slane %v122_v43, 4  ;;  %v134_v46 = vrot.slane %v133_v44, 4 }
  0xa2   :  { %vm124_vm8 = vcmp.lt.s32.totalorder %v122_v43, %v123_v45  ;;  %vm135_vm9 = vcmp.lt.s32.totalorder %v133_v44, %v134_v46 }
  0xa3   :  { %v125_v47 = vsel %vm124_vm8, %v122_v43, %v123_v45  ;;  %v136_v48 = vsel %vm135_vm9, %v133_v44, %v134_v46 }
  0xa4   :  { %v126_v49 = vrot.slane %v125_v47, 2  ;;  %v137_v50 = vrot.slane %v136_v48, 2 }
  0xa6   :  { %vm127_vm10 = vcmp.lt.s32.totalorder %v125_v47, %v126_v49  ;;  %vm138_vm11 = vcmp.lt.s32.totalorder %v136_v48, %v137_v50 }
  0xa7   :  { %v128_v51 = vsel %vm127_vm10, %v125_v47, %v126_v49  ;;  %v139_v52 = vsel %vm138_vm11, %v136_v48, %v137_v50 }
  0xa8   :  { %v129_v53 = vrot.slane %v128_v51, 1  ;;  %v140_v54 = vrot.slane %v139_v52, 1 }
  0xa9   :  { %v727_v60 = vpop.trf.xlu1 }
  0xaa   :  { %vm130_vm12 = vcmp.lt.s32.totalorder %v128_v51, %v129_v53  ;;  %vm141_vm13 = vcmp.lt.s32.totalorder %v139_v52, %v140_v54 }
  0xab   :  { %v717_v57 = vsel %vm130_vm12, %v128_v51, %v129_v53  ;;  %v719_v58 = vsel %vm141_vm13, %v139_v52, %v140_v54 }
  0xac   :  { %vm145_vm14 = vcmp.eq.s32.totalorder %v701_v36, %v717_v57  ;;  %vm146_vm15 = vcmp.eq.s32.totalorder %v701_v36, %v719_v58  ;;  %vm143_vm3 = vcmp.eq.s32.totalorder %v698_v31, %v717_v57  ;;  %vm144_vm4 = vcmp.eq.s32.totalorder %v698_v31, %v719_v58 }
  0xad   :  { %517 = vmatpush.msk.msra.mxu2 %vm145_vm14, %v620_v59  ;;  %520 = vmatpush.msk.msra.mxu3 %vm146_vm15, %v620_v59  ;;  %vm443_vm14 = vcmask 1040384  }
  0xaf   :  { %518 = vmatpush.msk.msra.mxu2 %vm143_vm3, %v620_v59  ;;  %521 = vmatpush.msk.msra.mxu3 %vm144_vm4, %v620_v59 }
  0xb0   :  { %519 = vmatmul.msk.f32.vlgmr.msra.gmra.mxu2 %vm187_vm2, %v727_v60  ;;  %522 = vmatmul.msk.f32.vlgmr.msra.gmra.mxu3 %vm187_vm2, %v727_v60 }
  0xb1   :  { %523 = vmatpush.msk.msrb.mxu2 %vm35_vm0, %v255_v61  ;;  %526 = vmatpush.msk.msrb.mxu3 %vm35_vm0, %v256_v62 }
  0xb8   :  { %524 = vmatmul.msk.f32.vlgmr.msrb.gmra.mxu2 %vm22_vm1, %v662_v2  ;;  %527 = vmatmul.msk.f32.vlgmr.msrb.gmra.mxu3 %vm22_vm1, %v662_v2 }
  0xc0   :  { %525 = vmatmul.msk.f32.gmra.mxu2 %vm22_vm1, %v679_v5  ;;  %528 = vmatmul.msk.f32.gmra.mxu3 %vm22_vm1, %v679_v5 }
 0x133   :  { %v755_v63 = vpop.f32.mrf.mxu2  ;;  %v757_v3 = vpop.f32.mrf.mxu3 }
 0x134   :  { %v231_v53 = vsub.f32 %v755_v63, %v652_v0 }
 0x13b   :  { %v278_v4 = vpop.f32.mrf.mxu2  ;;  %v301_v6 = vpop.f32.mrf.mxu3 }
 0x13c   :  { %v307_v7 = vmul.f32 2.0, %v278_v4  ;;  %v308_v9 = vmul.f32 2.0, %v301_v6 }
 0x13e   :  { %v311_v2 = vsub.f32 %v689_v8, %v307_v7  ;;  %v312_v15 = vsub.f32 %v689_v8, %v308_v9 }
 0x143   :  { %v281_v10 = vpop.f32.mrf.mxu2  ;;  %v304_v11 = vpop.f32.mrf.mxu3 }
 0x144   :  { %v309_v12 = vmul.f32 2.0, %v281_v10  ;;  %v310_v14 = vmul.f32 2.0, %v304_v11 }
 0x146   :  { %v313_v16 = vsub.f32 %v691_v13, %v309_v12  ;;  %v314_v5 = vsub.f32 %v691_v13, %v310_v14 }
 0x148   :  { %v315_v17 = vmin.f32 %v311_v2, %v313_v16  ;;  %v322_v18 = vmin.f32 %v312_v15, %v314_v5 }
 0x14a   :  { %v316_v19 = vrot.slane %v315_v17, 4  ;;  %v323_v20 = vrot.slane %v322_v18, 4 }
 0x14c   :  { %v317_v21 = vmin.f32 %v315_v17, %v316_v19  ;;  %v324_v22 = vmin.f32 %v322_v18, %v323_v20 }
 0x14e   :  { %v318_v23 = vrot.slane %v317_v21, 2  ;;  %v325_v24 = vrot.slane %v324_v22, 2 }
 0x150   :  { %v319_v25 = vmin.f32 %v317_v21, %v318_v23  ;;  %v326_v27 = vmin.f32 %v324_v22, %v325_v24 }
 0x152   :  { %v320_v28 = vrot.slane %v319_v25, 1  ;;  %v327_v29 = vrot.slane %v326_v27, 1 }
 0x154   :  { %v321_v30 = vmin.f32 %v319_v25, %v320_v28  ;;  %v328_v32 = vmin.f32 %v326_v27, %v327_v29 }
 0x156   :  { %vm329_vm1 = vcmp.eq.f32.partialorder %v311_v2, %v321_v30  ;;  %vm331_vm5 = vcmp.eq.f32.partialorder %v313_v16, %v321_v30  ;;  %vm330_vm6 = vcmp.eq.f32.partialorder %v312_v15, %v328_v32  ;;  %vm332_vm7 = vcmp.eq.f32.partialorder %v314_v5, %v328_v32 }
 0x157   :  { %v333_v8 = vsel %vm329_vm1, %v698_v31, 16  ;;  %v335_v13 = vsel %vm331_vm5, %v701_v36, 16  ;;  %v334_v33 = vsel %vm330_vm6, %v698_v31, 16  ;;  %v336_v34 = vsel %vm332_vm7, %v701_v36, 16 }
 0x158   :  { %vm337_vm8 = vcmp.lt.s32.totalorder %v333_v8, %v335_v13  ;;  %vm348_vm9 = vcmp.lt.s32.totalorder %v334_v33, %v336_v34  ;;  %vm447_vm5 = vcmask 1041408  }
 0x159   :  { %v338_v35 = vsel %vm337_vm8, %v333_v8, %v335_v13  ;;  %v349_v37 = vsel %vm348_vm9, %v334_v33, %v336_v34 }
 0x15a   :  { %v339_v38 = vrot.slane %v338_v35, 4  ;;  %v350_v39 = vrot.slane %v349_v37, 4 }
 0x15c   :  { %vm340_vm10 = vcmp.lt.s32.totalorder %v338_v35, %v339_v38  ;;  %vm351_vm11 = vcmp.lt.s32.totalorder %v349_v37, %v350_v39 }
 0x15d   :  { %v341_v40 = vsel %vm340_vm10, %v338_v35, %v339_v38  ;;  %v352_v41 = vsel %vm351_vm11, %v349_v37, %v350_v39 }
 0x15e   :  { %v342_v42 = vrot.slane %v341_v40, 2  ;;  %v353_v43 = vrot.slane %v352_v41, 2 }
 0x160   :  { %vm343_vm12 = vcmp.lt.s32.totalorder %v341_v40, %v342_v42  ;;  %vm354_vm13 = vcmp.lt.s32.totalorder %v352_v41, %v353_v43 }
 0x161   :  { %v344_v44 = vsel %vm343_vm12, %v341_v40, %v342_v42  ;;  %v355_v45 = vsel %vm354_vm13, %v352_v41, %v353_v43 }
 0x162   :  { %v345_v46 = vrot.slane %v344_v44, 1  ;;  %v356_v47 = vrot.slane %v355_v45, 1 }
 0x164   :  { %vm346_vm15 = vcmp.lt.s32.totalorder %v344_v44, %v345_v46  ;;  %vm357_vm3 = vcmp.lt.s32.totalorder %v355_v45, %v356_v47 }
 0x165   :  { %v347_v48 = vsel %vm346_vm15, %v344_v44, %v345_v46  ;;  %v358_v49 = vsel %vm357_vm3, %v355_v45, %v356_v47 }
 0x166   :  { %vm361_vm4 = vcmp.eq.s32.totalorder %v701_v36, %v347_v48  ;;  %vm362_vm1 = vcmp.eq.s32.totalorder %v701_v36, %v358_v49  ;;  %v445_v50 = vsel %vm443_vm14, %v719_v58, %v358_v49  ;;  %vm359_vm6 = vcmp.eq.s32.totalorder %v698_v31, %v347_v48 }
 0x167   :  { %533 = vmatpush.msk.msrb.mxu0 %vm361_vm4, %v620_v59  ;;  %536 = vmatpush.msk.msrb.mxu1 %vm362_vm1, %v620_v59  ;;  %v446_v51 = vrot.slane %v445_v50, 6  ;;  %vm360_vm7 = vcmp.eq.s32.totalorder %v698_v31, %v358_v49  ;;  %v444_v52 = vsel %vm443_vm14, %v717_v57, %v347_v48  ;;  %v232_v31 = vsub.f32 %v757_v3, %v657_v1 }
 0x168   :  { %v233_v57 = vmul.f32 %v231_v53, %v231_v53 }
 0x169   :  { %534 = vmatpush.msk.msrb.mxu0 %vm359_vm6, %v620_v59  ;;  %537 = vmatpush.msk.msrb.mxu1 %vm360_vm7, %v620_v59  ;;  %v448_v36 = vsel %vm447_vm5, %v444_v52, %v446_v51  ;;  %v234_v54 = vmul.f32 %v232_v31, %v232_v31 }
 0x16a   :  { %535 = vmatmul.msk.f32.vlgmr.msrb.gmra.mxu0 %vm187_vm2, %v727_v60  ;;  %538 = vmatmul.msk.f32.vlgmr.msrb.gmra.mxu1 %vm187_vm2, %v727_v60  ;;  %449 = vst [vmem:[#allocation4] sm:$0xf] %v448_v36  ;;  %v235_v59 = vsel %vm35_vm0, %v233_v57, 0.0 }
 0x16b   :  { %481 = dma.vmem_to_hbm [thread:$0]  %s477_s29, 64, %s479_s27, [#allocation5]   ;;  %v242_v58 = vsel %vm35_vm0, %v234_v54, 0.0  ;;  %v236_v4 = vrot.slane %v235_v59, 4 }
 0x16c   :  { %v243_v60 = vrot.slane %v242_v58, 4 }
 0x16d   :  { %v237_v12 = vadd.f32 %v236_v4, %v235_v59 }
 0x16e   :  { %v244_v6 = vadd.f32 %v243_v60, %v242_v58 }
 0x16f   :  { %v238_v56 = vrot.slane %v237_v12, 2 }
 0x170   :  { %v245_v5 = vrot.slane %v244_v6, 2 }
 0x172   :  { %v246_v18 = vadd.f32 %v245_v5, %v244_v6 }
 0x1e7   :  { %v388_v7 = vpop.f32.mrf.mxu0  ;;  %v408_v9 = vpop.f32.mrf.mxu1 }
 0x1e8   :  { %v413_v0 = vsub.f32 %v388_v7, %v255_v61  ;;  %v435_v1 = vrot.slane %v388_v7, 4  ;;  %v414_v10 = vsub.f32 %v408_v9, %v256_v62  ;;  %v436_v11 = vrot.slane %v408_v9, 4 }
 0x1ea   :  { %v415_v14 = vmul.f32 %v413_v0, %v413_v0  ;;  %v416_v2 = vmul.f32 %v414_v10, %v414_v10  ;;  %v439_v15 = vsel %vm35_vm0, %v755_v63, %v435_v1  ;;  %v440_v16 = vsel %vm35_vm0, %v757_v3, %v436_v11 }
 0x1eb   :  { %441 = vst [vmem:[#allocation2] sm:$0xff] %v439_v15  ;;  %v239_v63 = vadd.f32 %v238_v56, %v237_v12  ;;  %v247_v3 = vrot.slane %v246_v18, 1 }
 0x1ec   :  { %v417_v55 = vsel %vm35_vm0, %v415_v14, 0.0  ;;  %v424_v61 = vsel %vm35_vm0, %v416_v2, 0.0  ;;  %442 = vst [vmem:[#allocation2 + $0x8] sm:$0xff] %v440_v16  ;;  %vm457_vm0 = vcmp.lt.s32.totalorder %v96_v26, 256 }
 0x1ed   :  { %v418_v62 = vrot.slane %v417_v55, 4  ;;  %v425_v17 = vrot.slane %v424_v61, 4  ;;  %470 = dma.vmem_to_hbm [thread:$0]  %s466_s30, 256, %s468_s7, [#allocation3]   ;;  %v240_v25 = vrot.slane %v239_v63, 1  ;;  %v248_v29 = vadd.f32 %v247_v3, %v246_v18 }
 0x1ef   :  { %v419_v19 = vadd.f32 %v418_v62, %v417_v55  ;;  %v426_v20 = vadd.f32 %v425_v17, %v424_v61  ;;  %v241_v8 = vadd.f32 %v240_v25, %v239_v63 }
 0x1f1   :  { %v420_v21 = vrot.slane %v419_v19, 2  ;;  %v427_v22 = vrot.slane %v426_v20, 2 }
 0x1f3   :  { %v421_v23 = vadd.f32 %v420_v21, %v419_v19  ;;  %v428_v24 = vadd.f32 %v427_v22, %v426_v20 }
 0x1f5   :  { %v422_v27 = vrot.slane %v421_v23, 1  ;;  %v429_v28 = vrot.slane %v428_v24, 1 }
 0x1f7   :  { %v423_v30 = vadd.f32 %v422_v27, %v421_v23  ;;  %v430_v32 = vadd.f32 %v429_v28, %v428_v24 }
 0x1f9   :  { %v432_v13 = vadd.f32 %v430_v32, %v248_v29  ;;  %v431_v33 = vadd.f32 %v423_v30, %v241_v8 }
 0x1fb   :  { %v452_v34 = vrot.slane %v432_v13, 7 }
 0x1fd   :  { %v453_v35 = vsel %vm443_vm14, %v431_v33, %v452_v34 }
 0x1fe   :  { %459 = vst.msk [vmem:[#allocation6] sm:$0x3] %vm457_vm0, %v453_v35 }
 0x1ff   :  { %492 = dma.vmem_to_hbm [thread:$0]  %s488_s8, 32, %s490_s11, [#allocation5]  }
 0x200   :  { %616 = dma.done.wait [#allocation3], 256  }
 0x201   :  { %617 = vsyncadd [#allocation3], 4294967040 }
 0x202   :  { %618 = dma.done.wait [#allocation5], 96  }
 0x203   :  { %619 = vsyncadd [#allocation5], 4294967200 }
 0x204   :  { %505 = vsyncpa [#allocation3], 1 }
 0x205   :  { %506 = vsyncpa [#allocation5], 1 }

</bundles_post_ra>
